<compile_context>
chip_gen: v5e
topology: v5e:2x2
jax: 0.10.0
libtpu: 0.0.40
codegen_flags: <defaults>
</compile_context>

<pallas_src>
import functools
import math

import jax
import jax.numpy as jnp
from jax.experimental import pallas as pl
from jax.experimental.pallas import tpu as pltpu

_LOG_2PI = math.log(2.0 * math.pi)
_LEAKY_SLOPE = 0.01  # torch.nn.LeakyReLU default negative_slope


def _round_up(n, m):
    return ((n + m - 1) // m) * m


def _vmem_budget_bytes():
    """~Half of physical VMEM (v5e/v6e: 128 MiB, v7x: 64 MiB), clamped to [16, 64] MiB."""
    try:
        cap = pltpu.get_tpu_info().vmem_capacity_bytes
    except Exception:
        cap = 128 * 1024 * 1024
    return int(max(16 * 1024 * 1024, min(cap // 2, 64 * 1024 * 1024)))


def _rnvp_kernel(xt_ref, w1_ref, b1_ref, w2_ref, b2_ref,
                 zt_ref, logpz_ref, logjac_ref, *, k, d, flip):
    """One batch tile in transposed layout: xt/zt are (d, tb), logs are (1, tb)."""
    dk = d - k
    xt = xt_ref[...].astype(jnp.float32)                 # (d, tb), lane-dense

    # x1 drives the nets, x2 is transformed (PyTorch module semantics).
    if flip:
        x1 = xt[k:, :]                                   # (d-k, tb); requires k == d-k
        x2 = xt[:k, :]                                   # (k, tb)
    else:
        x1 = xt[:k, :]                                   # (k, tb)
        x2 = xt[k:, :]                                   # (d-k, tb)

    # Fused first layer of sig_net and mu_net: (2H, tb).
    h = jnp.dot(w1_ref[...], x1, preferred_element_type=jnp.float32) + b1_ref[...]
    h = jnp.where(h > 0, h, _LEAKY_SLOPE * h)            # LeakyReLU

    # Fused (block-diagonal) second layer: (2*(d-k), tb) -> sig | mu.
    sm = jnp.dot(w2_ref[...], h, preferred_element_type=jnp.float32) + b2_ref[...]
    sig = sm[:dk, :]
    mu = sm[dk:, :]

    # Affine coupling.
    z2 = x2 * jnp.exp(sig) + mu

    # Two sublane-slab stores; no in-kernel concatenate (review item).
    if flip:
        zt_ref[:k, :] = z2.astype(zt_ref.dtype)          # transformed half first
        zt_ref[k:, :] = x1.astype(zt_ref.dtype)          # pass-through half
    else:
        zt_ref[:k, :] = x1.astype(zt_ref.dtype)
        zt_ref[k:, :] = z2.astype(zt_ref.dtype)

    # Per-row reductions are cheap sublane reductions; outputs lane-dense (1, tb).
    sq = (jnp.sum(x1 * x1, axis=0, keepdims=True)
          + jnp.sum(z2 * z2, axis=0, keepdims=True))
    logpz_ref[...] = -0.5 * sq - 0.5 * d * _LOG_2PI
    logjac_ref[...] = jnp.sum(sig, axis=0, keepdims=True)


def _fuse_params(params, d, k):
    """Fuse the sig/mu MLPs into transposed weights for the (feature, batch) layout."""
    (w1s, b1s, w2s, b2s, w1m, b1m, w2m, b2m) = params
    dk = d - k
    hidden = w1s.shape[1]
    w1_t = jnp.concatenate([w1s, w1m], axis=1).T.astype(jnp.float32)     # (2H, k)
    b1_t = jnp.concatenate([b1s, b1m], axis=1).T.astype(jnp.float32)     # (2H, 1)
    w2_t = jnp.zeros((2 * dk, 2 * hidden), jnp.float32)                  # block-diag
    w2_t = w2_t.at[:dk, :hidden].set(w2s.T).at[dk:, hidden:].set(w2m.T)
    b2_t = jnp.concatenate([b2s, b2m], axis=1).T.astype(jnp.float32)     # (2dk, 1)
    return w1_t, b1_t, w2_t, b2_t


def rnvp_forward(x, params, k, flip=False, block_b=65536, transposed_io=False):
    """R_NVP.forward.

    x: [B, d] (or [d, B] if transposed_io=True), float32 or bfloat16.
    Returns (z_hat, log_pz, log_jacob); z_hat in x's layout/dtype, logs float32 [B].
    """
    if transposed_io:
        d, B = x.shape
    else:
        B, d = x.shape
    dk = d - k
    if flip and k != dk:
        # Mirrors the PyTorch module's implicit assumption for flip=True.
        raise ValueError("flip=True requires k == d - k")

    w1_t, b1_t, w2_t, b2_t = _fuse_params(params, d, k)
    h2 = w1_t.shape[0]                                   # 2 * hidden

    # ---- batch-tile sizing: HBM-bound kernel -> big tiles, VMEM-derived ceiling ----
    vmem_budget = _vmem_budget_bytes()
    # Conservative per-row VMEM bytes: double-buffered x/z/log tiles + f32
    # intermediates (the hidden activation dominates).
    per_row = 4 * (4 * d + 4 + 2 * h2 + 4 * dk + d)
    cap_rows = max(128, (vmem_budget // per_row) // 128 * 128)
    tb = min(_round_up(block_b, 128), cap_rows, _round_up(B, 128))
    # Keep >=2 (ideally >=4) tiles for large batches: v7x has two TensorCores and
    # the "parallel" grid axis only helps when there are tiles to shard.
    if B >= 4 * 8192:
        tb = min(tb, _round_up(pl.cdiv(B, 4), 128))
    elif B >= 2 * 8192:
        tb = min(tb, _round_up(pl.cdiv(B, 2), 128))
    nb = pl.cdiv(B, tb)
    b_pad = nb * tb

    # Boundary layout handling: for the standard [B, d] interface the transpose is a
    # single XLA copy and the ragged-batch pad fuses into it (no separate pad pass);
    # transposed_io=True callers skip the copies entirely.
    if transposed_io:
        xt = x
    else:
        xt = jnp.transpose(x)                            # (d, B)
    if b_pad != B:
        xt = jnp.pad(xt, ((0, 0), (0, b_pad - B)))

    kernel = functools.partial(_rnvp_kernel, k=k, d=d, flip=flip)

    grid_spec = pltpu.PrefetchScalarGridSpec(
        num_scalar_prefetch=0,
        grid=(nb,),
        in_specs=[
            pl.BlockSpec((d, tb), lambda i: (0, i)),      # x^T batch tile (lane-dense)
            pl.BlockSpec(w1_t.shape, lambda i: (0, 0)),   # weights stay VMEM-resident
            pl.BlockSpec(b1_t.shape, lambda i: (0, 0)),
            pl.BlockSpec(w2_t.shape, lambda i: (0, 0)),
            pl.BlockSpec(b2_t.shape, lambda i: (0, 0)),
        ],
        out_specs=(
            pl.BlockSpec((d, tb), lambda i: (0, i)),      # z^T tile
            pl.BlockSpec((1, tb), lambda i: (0, i)),      # log_pz (lane-dense row)
            pl.BlockSpec((1, tb), lambda i: (0, i)),      # log_jacob (lane-dense row)
        ),
    )

    zt, logpz, logjac = pl.pallas_call(
        kernel,
        out_shape=(
            jax.ShapeDtypeStruct((d, b_pad), x.dtype),
            jax.ShapeDtypeStruct((1, b_pad), jnp.float32),
            jax.ShapeDtypeStruct((1, b_pad), jnp.float32),
        ),
        grid_spec=grid_spec,
        compiler_params=pltpu.CompilerParams(
            dimension_semantics=("parallel",),
            vmem_limit_bytes=vmem_budget,
        ),
    )(xt, w1_t, b1_t, w2_t, b2_t)

    log_pz = logpz[0, :B]
    log_jacob = logjac[0, :B]
    if transposed_io:
        z_hat = zt[:, :B] if b_pad != B else zt
    else:
        z_hat = jnp.transpose(zt[:, :B])                  # slice fuses into this copy
    return z_hat, log_pz, log_jacob


def init_params(key, d, k, hidden):
    """Deterministic parameter init (matches module shapes; weights stored [in, out])."""
    ks = jax.random.split(key, 8)

    def lin(kw, kb, fan_in, fan_out):
        bound = 1.0 / math.sqrt(fan_in)
        w = jax.random.uniform(kw, (fan_in, fan_out), jnp.float32, -bound, bound)
        b = jax.random.uniform(kb, (1, fan_out), jnp.float32, -bound, bound)
        return w, b

    w1s, b1s = lin(ks[0], ks[1], k, hidden)
    w2s, b2s = lin(ks[2], ks[3], hidden, d - k)
    w1m, b1m = lin(ks[4], ks[5], k, hidden)
    w2m, b2m = lin(ks[6], ks[7], hidden, d - k)
    return (w1s, b1s, w2s, b2s, w1m, b1m, w2m, b2m)


def _reference(x, params, k, flip=False):
    """Pure-JAX reference (un-fused weights) mirroring the PyTorch module."""
    (w1s, b1s, w2s, b2s, w1m, b1m, w2m, b2m) = params
    x1, x2 = x[:, :k], x[:, k:]
    if flip:
        x1, x2 = x2, x1

    def mlp(z, w1, b1, w2, b2):
        h = z @ w1 + b1
        h = jnp.where(h > 0, h, _LEAKY_SLOPE * h)
        return h @ w2 + b2

    sig = mlp(x1, w1s, b1s, w2s, b2s)
    mu = mlp(x1, w1m, b1m, w2m, b2m)
    z1, z2 = x1, x2 * jnp.exp(sig) + mu
    if flip:
        z1, z2 = z2, z1
    z_hat = jnp.concatenate([z1, z2], -1)
    d = x.shape[1]
    log_pz = -0.5 * jnp.sum(z_hat * z_hat, -1) - 0.5 * d * _LOG_2PI
    return z_hat, log_pz, jnp.sum(sig, -1)


def _check(x, params, k, flip, block_b=65536):
    z, lp, lj = rnvp_forward(x, params, k, flip=flip, block_b=block_b)
    jax.block_until_ready((z, lp, lj))
    z_r, lp_r, lj_r = _reference(x, params, k, flip=flip)
    assert jnp.allclose(z, z_r, atol=2e-5, rtol=2e-5), "z_hat mismatch"
    assert jnp.allclose(lp, lp_r, atol=2e-5, rtol=2e-5), "log_pz mismatch"
    assert jnp.allclose(lj, lj_r, atol=2e-5, rtol=2e-5), "log_jacob mismatch"


if __name__ == "__main__":
    d, k, hidden = 8, 4, 32
    key = jax.random.PRNGKey(0)
    kx, kx2, kp = jax.random.split(key, 3)
    params = init_params(kp, d, k, hidden)

    # Small batch, single tile, both flip settings.
    x = jax.random.normal(kx, (8, d), jnp.float32)
    _check(x, params, k, flip=False)
    _check(x, params, k, flip=True)

    # Ragged batch with multiple grid tiles (exercises padding + pipelining).
    x_big = jax.random.normal(kx2, (300, d), jnp.float32)
    _check(x_big, params, k, flip=False, block_b=128)
    _check(x_big, params, k, flip=True)

    # Transposed-I/O fast path (no boundary transpose/pad copies for [d, B] callers).
    z_t, lp_t, lj_t = rnvp_forward(x_big.T, params, k, flip=False, transposed_io=True)
    jax.block_until_ready((z_t, lp_t, lj_t))
    z_r, lp_r, lj_r = _reference(x_big, params, k, flip=False)
    assert jnp.allclose(z_t.T, z_r, atol=2e-5, rtol=2e-5), "transposed z_hat mismatch"
    assert jnp.allclose(lp_t, lp_r, atol=2e-5, rtol=2e-5), "transposed log_pz mismatch"
    assert jnp.allclose(lj_t, lj_r, atol=2e-5, rtol=2e-5), "transposed log_jacob mismatch"

    print("KERNEL_OK")
</pallas_src>

<mosaic_0001>
module attributes {stable_mosaic.version = 11 : i64} {
  func.func @_rnvp_kernel(%arg0: i32, %arg1: memref<8x128xf32, #tpu.memory_space<vmem>>, %arg2: memref<64x4xf32, #tpu.memory_space<vmem>>, %arg3: memref<64x1xf32, #tpu.memory_space<vmem>>, %arg4: memref<8x64xf32, #tpu.memory_space<vmem>>, %arg5: memref<8x1xf32, #tpu.memory_space<vmem>>, %arg6: memref<8x128xf32, #tpu.memory_space<vmem>>, %arg7: memref<1x128xf32, #tpu.memory_space<vmem>>, %arg8: memref<1x128xf32, #tpu.memory_space<vmem>>) attributes {dimension_semantics = [#tpu.dimension_semantics<parallel>], iteration_bounds = array<i64: 1>, scalar_prefetch = 0 : i64, scratch_operands = 0 : i64, tpu.core_type = #tpu.core_type<tc>, window_params = [{transform_indices = @transform_0, window_bounds = array<i64: 8, 128>}, {pipeline_mode = #tpu.pipeline_mode<synchronous>, transform_indices = @transform_1, window_bounds = array<i64: 64, 4>}, {pipeline_mode = #tpu.pipeline_mode<synchronous>, transform_indices = @transform_2, window_bounds = array<i64: 64, 1>}, {pipeline_mode = #tpu.pipeline_mode<synchronous>, transform_indices = @transform_3, window_bounds = array<i64: 8, 64>}, {pipeline_mode = #tpu.pipeline_mode<synchronous>, transform_indices = @transform_4, window_bounds = array<i64: 8, 1>}, {transform_indices = @transform_5, window_bounds = array<i64: 8, 128>}, {transform_indices = @transform_6, window_bounds = array<i64: 1, 128>}, {transform_indices = @transform_7, window_bounds = array<i64: 1, 128>}]} {
    %c0 = arith.constant 0 : index
    %c0_0 = arith.constant 0 : index
    %0 = vector.load %arg1[%c0, %c0_0] : memref<8x128xf32, #tpu.memory_space<vmem>>, vector<8x128xf32>
    %1 = vector.extract_strided_slice %0 {offsets = [0, 0], sizes = [4, 128], strides = [1, 1]} : vector<8x128xf32> to vector<4x128xf32>
    %2 = vector.extract_strided_slice %0 {offsets = [4, 0], sizes = [4, 128], strides = [1, 1]} : vector<8x128xf32> to vector<4x128xf32>
    %c0_1 = arith.constant 0 : index
    %c0_2 = arith.constant 0 : index
    %3 = vector.load %arg2[%c0_1, %c0_2] : memref<64x4xf32, #tpu.memory_space<vmem>>, vector<64x4xf32>
    %cst = arith.constant dense<0.000000e+00> : vector<64x128xf32>
    %4 = tpu.matmul %3, %1, %cst {dimension_numbers = #tpu.dot_dimension_numbers<[1], [0], [0], [1], [0, 0, 1, 1], [], []>} : vector<64x4xf32>, vector<4x128xf32>, vector<64x128xf32> -> vector<64x128xf32>
    %c0_3 = arith.constant 0 : index
    %c0_4 = arith.constant 0 : index
    %5 = vector.load %arg3[%c0_3, %c0_4] : memref<64x1xf32, #tpu.memory_space<vmem>>, vector<64x1xf32>
    %6 = vector.broadcast %5 : vector<64x1xf32> to vector<64x128xf32>
    %7 = arith.addf %4, %6 : vector<64x128xf32>
    %cst_5 = arith.constant 0.000000e+00 : f32
    %8 = vector.broadcast %cst_5 : f32 to vector<64x128xf32>
    %9 = arith.cmpf ogt, %7, %8 : vector<64x128xf32>
    %cst_6 = arith.constant 0.00999999977 : f32
    %10 = vector.broadcast %cst_6 : f32 to vector<64x128xf32>
    %11 = arith.mulf %10, %7 : vector<64x128xf32>
    %12 = arith.select %9, %7, %11 : vector<64x128xi1>, vector<64x128xf32>
    %c0_7 = arith.constant 0 : index
    %c0_8 = arith.constant 0 : index
    %13 = vector.load %arg4[%c0_7, %c0_8] : memref<8x64xf32, #tpu.memory_space<vmem>>, vector<8x64xf32>
    %cst_9 = arith.constant dense<0.000000e+00> : vector<8x128xf32>
    %14 = tpu.matmul %13, %12, %cst_9 {dimension_numbers = #tpu.dot_dimension_numbers<[1], [0], [0], [1], [0, 0, 1, 1], [], []>} : vector<8x64xf32>, vector<64x128xf32>, vector<8x128xf32> -> vector<8x128xf32>
    %c0_10 = arith.constant 0 : index
    %c0_11 = arith.constant 0 : index
    %15 = vector.load %arg5[%c0_10, %c0_11] : memref<8x1xf32, #tpu.memory_space<vmem>>, vector<8x1xf32>
    %16 = vector.broadcast %15 : vector<8x1xf32> to vector<8x128xf32>
    %17 = arith.addf %14, %16 : vector<8x128xf32>
    %18 = vector.extract_strided_slice %17 {offsets = [0, 0], sizes = [4, 128], strides = [1, 1]} : vector<8x128xf32> to vector<4x128xf32>
    %19 = vector.extract_strided_slice %17 {offsets = [4, 0], sizes = [4, 128], strides = [1, 1]} : vector<8x128xf32> to vector<4x128xf32>
    %20 = math.exp %18 : vector<4x128xf32>
    %21 = arith.mulf %2, %20 : vector<4x128xf32>
    %22 = arith.addf %21, %19 : vector<4x128xf32>
    %c0_12 = arith.constant 0 : index
    %c0_13 = arith.constant 0 : index
    %23 = vector.load %arg6[%c0_12, %c0_13] : memref<8x128xf32, #tpu.memory_space<vmem>>, vector<4x128xf32>
    tpu.vector_store %arg6[%c0_12, %c0_13], %1 {strides = array<i32>} : memref<8x128xf32, #tpu.memory_space<vmem>>, vector<4x128xf32>,
    %c4 = arith.constant 4 : index
    %c0_14 = arith.constant 0 : index
    %24 = vector.load %arg6[%c4, %c0_14] : memref<8x128xf32, #tpu.memory_space<vmem>>, vector<4x128xf32>
    tpu.vector_store %arg6[%c4, %c0_14], %22 {strides = array<i32>} : memref<8x128xf32, #tpu.memory_space<vmem>>, vector<4x128xf32>,
    %25 = arith.mulf %1, %1 : vector<4x128xf32>
    %cst_15 = arith.constant dense<0.000000e+00> : vector<128xf32>
    %26 = vector.multi_reduction <add>, %25, %cst_15 [0] : vector<4x128xf32> to vector<128xf32>
    %27 = vector.shape_cast %26 : vector<128xf32> to vector<1x128xf32>
    %28 = arith.mulf %22, %22 : vector<4x128xf32>
    %cst_16 = arith.constant dense<0.000000e+00> : vector<128xf32>
    %29 = vector.multi_reduction <add>, %28, %cst_16 [0] : vector<4x128xf32> to vector<128xf32>
    %30 = vector.shape_cast %29 : vector<128xf32> to vector<1x128xf32>
    %31 = arith.addf %27, %30 : vector<1x128xf32>
    %cst_17 = arith.constant -5.000000e-01 : f32
    %32 = vector.broadcast %cst_17 : f32 to vector<1x128xf32>
    %33 = arith.mulf %32, %31 : vector<1x128xf32>
    %cst_18 = arith.constant 7.35150814 : f32
    %34 = vector.broadcast %cst_18 : f32 to vector<1x128xf32>
    %35 = arith.subf %33, %34 : vector<1x128xf32>
    %c0_19 = arith.constant 0 : index
    %c0_20 = arith.constant 0 : index
    %36 = vector.load %arg7[%c0_19, %c0_20] : memref<1x128xf32, #tpu.memory_space<vmem>>, vector<1x128xf32>
    tpu.vector_store %arg7[%c0_19, %c0_20], %35 {strides = array<i32>} : memref<1x128xf32, #tpu.memory_space<vmem>>, vector<1x128xf32>,
    %cst_21 = arith.constant dense<0.000000e+00> : vector<128xf32>
    %37 = vector.multi_reduction <add>, %18, %cst_21 [0] : vector<4x128xf32> to vector<128xf32>
    %38 = vector.shape_cast %37 : vector<128xf32> to vector<1x128xf32>
    %c0_22 = arith.constant 0 : index
    %c0_23 = arith.constant 0 : index
    %39 = vector.load %arg8[%c0_22, %c0_23] : memref<1x128xf32, #tpu.memory_space<vmem>>, vector<1x128xf32>
    tpu.vector_store %arg8[%c0_22, %c0_23], %38 {strides = array<i32>} : memref<1x128xf32, #tpu.memory_space<vmem>>, vector<1x128xf32>,
    return
  }
  func.func @transform_0(%arg0: i32) -> (i32, i32) {
    %c0_i32 = arith.constant 0 : i32
    %c0_i32_0 = arith.constant 0 : i32
    return %c0_i32, %arg0 : i32, i32
  }
  func.func @transform_1(%arg0: i32) -> (i32, i32) {
    %c0_i32 = arith.constant 0 : i32
    %c0_i32_0 = arith.constant 0 : i32
    %c0_i32_1 = arith.constant 0 : i32
    return %c0_i32, %c0_i32_0 : i32, i32
  }
  func.func @transform_2(%arg0: i32) -> (i32, i32) {
    %c0_i32 = arith.constant 0 : i32
    %c0_i32_0 = arith.constant 0 : i32
    %c0_i32_1 = arith.constant 0 : i32
    return %c0_i32, %c0_i32_0 : i32, i32
  }
  func.func @transform_3(%arg0: i32) -> (i32, i32) {
    %c0_i32 = arith.constant 0 : i32
    %c0_i32_0 = arith.constant 0 : i32
    %c0_i32_1 = arith.constant 0 : i32
    return %c0_i32, %c0_i32_0 : i32, i32
  }
  func.func @transform_4(%arg0: i32) -> (i32, i32) {
    %c0_i32 = arith.constant 0 : i32
    %c0_i32_0 = arith.constant 0 : i32
    %c0_i32_1 = arith.constant 0 : i32
    return %c0_i32, %c0_i32_0 : i32, i32
  }
  func.func @transform_5(%arg0: i32) -> (i32, i32) {
    %c0_i32 = arith.constant 0 : i32
    %c0_i32_0 = arith.constant 0 : i32
    return %c0_i32, %arg0 : i32, i32
  }
  func.func @transform_6(%arg0: i32) -> (i32, i32) {
    %c0_i32 = arith.constant 0 : i32
    %c0_i32_0 = arith.constant 0 : i32
    return %c0_i32, %arg0 : i32, i32
  }
  func.func @transform_7(%arg0: i32) -> (i32, i32) {
    %c0_i32 = arith.constant 0 : i32
    %c0_i32_0 = arith.constant 0 : i32
    return %c0_i32, %arg0 : i32, i32
  }
}

</mosaic_0001>

<bundles_post_ra>
// kernel: tpu_custom_call.1
= control target key start
LH: loop header
LB: loop body
LE: loop exit
PB: predicated region body
PF: predicated region fallthrough
CT: control target
= control target key end

     0   :  { %13 = vsyncpa [#allocation3], 0  ;;  %vm107_vm0 = vcmask 1043456   ;;  %vm82_vm1 = vcmask 31744   ;;  %v392_v6 = vmov 0   ;;  %s525_s0 = inlined_call_operand.vmem [shape: f32[8,128], index: 0, kind: input, shape index: {}]   ;;  %s526_s1 = inlined_call_operand.vmem [shape: f32[64,4], index: 1, kind: input, shape index: {}]   ;;  %s527_s2 = inlined_call_operand.vmem [shape: f32[64,1], index: 2, kind: input, shape index: {}]   ;;  %s528_s3 = inlined_call_operand.vmem [shape: f32[8,64], index: 3, kind: input, shape index: {}]   ;;  %s529_s4 = inlined_call_operand.vmem [shape: f32[8,1], index: 4, kind: input, shape index: {}]   ;;  %s530_s5 = inlined_call_operand.hbm [shape: f32[8,128], index: 5, kind: output, shape index: {0}]   ;;  %s531_s6 = inlined_call_operand.hbm [shape: f32[1,128], index: 6, kind: output, shape index: {1}]   ;;  %s532_s7 = inlined_call_operand.hbm [shape: f32[1,128], index: 7, kind: output, shape index: {2}]  }
   0x1   :  { %v439_v0 = vld [vmem:[%s525_s0] sm:$0xff]  ;;  %v29_v1 = vld [vmem:[%s526_s1 + $0x18] sm:$0xff]  ;;  %v32_v2 = vld [vmem:[%s526_s1 + $0x30] sm:$0xff]  ;;  %312 = vset.pattern.permute.xlu1 %v392_v6  ;;  %311 = vset.pattern.permute.xlu0 %v392_v6 }
   0x2   :  { %305 = vmatpush.msk.msra.mxu2 %vm107_vm0, %v439_v0  ;;  %214 = vst [vmem:[#allocation2] sm:$0xf] %v439_v0  ;;  %306 = vmatpush.msk.msra.mxu3 %vm107_vm0, %v439_v0  ;;  %v26_v3 = vld [vmem:[%s526_s1] sm:$0xff]  ;;  %v41_v4 = vld [vmem:[%s527_s2 + $0x38] sm:$0xff]  ;;  %v39_v5 = vld [vmem:[%s527_s2 + $0x28] sm:$0xff] }
   0x3   :  { %298 = vmatmul.msk.f32.vlgmr.msra.gmra.mxu2 %vm82_vm1, %v29_v1  ;;  %301 = vmatmul.msk.f32.vlgmr.msra.gmra.mxu3 %vm82_vm1, %v32_v2  ;;  %v37_v7 = vld [vmem:[%s527_s2 + $0x18] sm:$0xff] }
   0x4   :  { %294 = vmatpush.msk.msra.mxu0 %vm107_vm0, %v439_v0  ;;  %79 = vperm.xlu0 %311, %v41_v4  }
   0x5   :  { %295 = vmatmul.msk.f32.vlgmr.msra.gmra.mxu0 %vm82_vm1, %v26_v3  ;;  %69 = vperm.xlu1 %312, %v39_v5  }
   0x6   :  { %313 = vset.pattern.permute.xlu2 %v392_v6 }
   0x7   :  { %14 = vsyncpa [#allocation5], 0  ;;  %v30_v8 = vld [vmem:[%s526_s1 + $0x20] sm:$0xff]  ;;  %v33_v9 = vld [vmem:[%s526_s1 + $0x38] sm:$0xff]  ;;  %59 = vperm.xlu2 %313, %v37_v7   ;;  %vm183_vm10 = vcmask 523264   ;;  %v216_v3 = vmul.f32 %v439_v0, %v439_v0  ;;  %s254_s14 = sshll.u32 %s530_s5, 4  ;;  %s255_s14 = int_to_ptr.hbm [resolvable:$true] %s254_s14 }
   0x8   :  { %v27_v10 = vld [vmem:[%s526_s1 + $0x8] sm:$0xff]  ;;  %v40_v11 = vld [vmem:[%s527_s2 + $0x30] sm:$0xff]  ;;  %v38_v12 = vld [vmem:[%s527_s2 + $0x20] sm:$0xff]  ;;  %s394_s5 = smov [#allocation4]   ;;  %s265_s18 = sshll.u32 %s531_s6, 4  ;;  %s266_s18 = int_to_ptr.hbm [resolvable:$true] %s265_s18 }
   0x9   :  { %v36_v13 = vld [vmem:[%s527_s2 + $0x10] sm:$0xff]  ;;  %v31_v14 = vld [vmem:[%s526_s1 + $0x28] sm:$0xff]  ;;  %v34_v17 = vld [vmem:[%s527_s2] sm:$0xff]  ;;  %v217_v5 = vsel %vm107_vm0, %v216_v3, 0.0  ;;  %s263_s15 = sshll.u32 %s394_s5, 4  ;;  %s395_s19 = smov [#allocation6]   ;;  %s264_s15 = int_to_ptr.vmem [resolvable:$true] %s263_s15 }
   0xa   :  { %v28_v15 = vld [vmem:[%s526_s1 + $0x10] sm:$0xff]  ;;  %v35_v16 = vld [vmem:[%s527_s2 + $0x8] sm:$0xff]  ;;  %v177_v18 = vld [vmem:[%s529_s4] sm:$0xff]  ;;  %s274_s20 = sshll.u32 %s395_s19, 4  ;;  %s276_s23 = sshll.u32 %s532_s7, 4  ;;  %s275_s20 = int_to_ptr.vmem [resolvable:$true] %s274_s20  ;;  %s277_s23 = int_to_ptr.hbm [resolvable:$true] %s276_s23 }
   0xb   :  { %299 = vmatmul.msk.f32.gmra.mxu2 %vm82_vm1, %v30_v8  ;;  %302 = vmatmul.msk.f32.gmra.mxu3 %vm82_vm1, %v33_v9  ;;  %v176_v58 = vld [vmem:[%s528_s3] sm:$0xff]  ;;  %v218_v9 = vrot.slane %v217_v5, 4  ;;  %s393_s3 = smov [#allocation2]  }
   0xc   :  { %74 = vperm.xlu0 %311, %v40_v11   ;;  %s252_s4 = sshll.u32 %s393_s3, 4  ;;  %s253_s4 = int_to_ptr.vmem [resolvable:$true] %s252_s4 }
   0xd   :  { %296 = vmatmul.msk.f32.gmra.mxu0 %vm82_vm1, %v27_v10  ;;  %64 = vperm.xlu1 %312, %v38_v12  }
   0xf   :  { %54 = vperm.xlu2 %313, %v36_v13  }
  0x13   :  { %300 = vmatmul.msk.f32.gmra.mxu2 %vm82_vm1, %v31_v14  ;;  %v219_v14 = vadd.f32 %v218_v9, %v217_v5 }
  0x14   :  { %49 = vperm.xlu0 %311, %v35_v16  }
  0x15   :  { %297 = vmatmul.msk.f32.gmra.mxu0 %vm82_vm1, %v28_v15  ;;  %44 = vperm.xlu1 %312, %v34_v17   ;;  %v220_v17 = vrot.slane %v219_v14, 2 }
  0x17   :  { %180 = vperm.xlu2 %313, %v177_v18  }
  0x61   :  { %v60_v26 = vpop.permute.xlu2 %59 }
  0x69   :  { %v55_v42 = vpop.permute.xlu2 %54 }
  0x71   :  { %v181_v60 = vpop.permute.xlu2 %180 }
  0x76   :  { %v80_v19 = vpop.permute.xlu0 %79 }
  0x77   :  { %v70_v21 = vpop.permute.xlu1 %69 }
  0x7e   :  { %v75_v24 = vpop.permute.xlu0 %74 }
  0x7f   :  { %v65_v31 = vpop.permute.xlu1 %64 }
  0x82   :  { %v128_v20 = vpop.f32.mrf.mxu0 }
  0x86   :  { %v137_v22 = vpop.f32.mrf.mxu2  ;;  %v146_v23 = vpop.f32.mrf.mxu3 }
  0x87   :  { %v147_v27 = vadd.f32 %v146_v23, %v75_v24  ;;  %v138_v39 = vadd.f32 %v137_v22, %v60_v26  ;;  %v50_v41 = vpop.permute.xlu0 %49  ;;  %v45_v46 = vpop.permute.xlu1 %44 }
  0x88   :  { %v129_v50 = vadd.f32 %v128_v20, %v45_v46 }
  0x89   :  { %v166_v33 = vmul.f32 0.01, %v147_v27  ;;  %vm158_vm3 = vcmp.gt.f32.partialorder %v147_v27, 0.0  ;;  %v163_v49 = vmul.f32 0.01, %v138_v39  ;;  %vm155_vm6 = vcmp.gt.f32.partialorder %v138_v39, 0.0 }
  0x8a   :  { %v131_v25 = vpop.f32.mrf.mxu0  ;;  %v160_v56 = vmul.f32 0.01, %v129_v50  ;;  %vm152_vm9 = vcmp.gt.f32.partialorder %v129_v50, 0.0 }
  0x8b   :  { %v174_v36 = vsel %vm158_vm3, %v147_v27, %v166_v33  ;;  %v132_v47 = vadd.f32 %v131_v25, %v50_v41  ;;  %v171_v53 = vsel %vm155_vm6, %v138_v39, %v163_v49 }
  0x8c   :  { %v168_v59 = vsel %vm152_vm9, %v129_v50, %v160_v56 }
  0x8d   :  { %v161_v54 = vmul.f32 0.01, %v132_v47  ;;  %vm153_vm8 = vcmp.gt.f32.partialorder %v132_v47, 0.0 }
  0x8e   :  { %v140_v28 = vpop.f32.mrf.mxu2  ;;  %v149_v29 = vpop.f32.mrf.mxu3 }
  0x8f   :  { %v150_v30 = vadd.f32 %v149_v29, %v80_v19  ;;  %v141_v35 = vadd.f32 %v140_v28, %v65_v31  ;;  %v169_v57 = vsel %vm153_vm8, %v132_v47, %v161_v54 }
  0x91   :  { %vm159_vm2 = vcmp.gt.f32.partialorder %v150_v30, 0.0  ;;  %v167_v32 = vmul.f32 0.01, %v150_v30  ;;  %v164_v45 = vmul.f32 0.01, %v141_v35  ;;  %vm156_vm5 = vcmp.gt.f32.partialorder %v141_v35, 0.0 }
  0x92   :  { %v134_v37 = vpop.f32.mrf.mxu0 }
  0x93   :  { %v175_v34 = vsel %vm159_vm2, %v150_v30, %v167_v32  ;;  %v135_v43 = vadd.f32 %v134_v37, %v55_v42  ;;  %v172_v51 = vsel %vm156_vm5, %v141_v35, %v164_v45 }
  0x94   :  { %195 = vmatpush.msra.mxu1 %v175_v34 }
  0x95   :  { %v162_v52 = vmul.f32 0.01, %v135_v43  ;;  %vm154_vm7 = vcmp.gt.f32.partialorder %v135_v43, 0.0 }
  0x96   :  { %v143_v38 = vpop.f32.mrf.mxu2  ;;  %196 = vmatpush.msra.mxu1 %v174_v36 }
  0x97   :  { %v144_v40 = vadd.f32 %v143_v38, %v70_v21  ;;  %v170_v55 = vsel %vm154_vm7, %v135_v43, %v162_v52  ;;  %v221_v21 = vadd.f32 %v220_v17, %v219_v14 }
  0x99   :  { %vm157_vm4 = vcmp.gt.f32.partialorder %v144_v40, 0.0  ;;  %v165_v44 = vmul.f32 0.01, %v144_v40  ;;  %v222_v23 = vrot.slane %v221_v21, 1 }
  0x9b   :  { %v173_v48 = vsel %vm157_vm4, %v144_v40, %v165_v44 }
  0x9c   :  { %197 = vmatpush.msra.mxu1 %v173_v48 }
  0x9e   :  { %198 = vmatpush.msra.mxu1 %v172_v51 }
  0xa0   :  { %199 = vmatpush.msra.mxu1 %v171_v53 }
  0xa2   :  { %200 = vmatpush.msra.mxu1 %v170_v55 }
  0xa4   :  { %201 = vmatpush.msra.mxu1 %v169_v57 }
  0xa6   :  { %202 = vmatpush.msra.mxu1 %v168_v59 }
  0xa7   :  { %303 = vmatmul.msk.f32.vlgmr.msra.gmra.mxu1 %vm183_vm10, %v176_v58 }
 0x124   :  { %v204_v61 = vpop.f32.mrf.mxu1 }
 0x125   :  { %v205_v62 = vadd.f32 %v204_v61, %v181_v60 }
 0x127   :  { %v207_v63 = vmul.f32 1.442695, %v205_v62  ;;  %v239_v1 = vsel %vm107_vm0, %v205_v62, 0.0 }
 0x128   :  { %v240_v2 = vrot.slane %v239_v1, 4 }
 0x129   :  { %314 = vpow2.f32 %v207_v63 }
 0x12a   :  { %v241_v4 = vadd.f32 %v240_v2, %v239_v1 }
 0x12c   :  { %v242_v6 = vrot.slane %v241_v4, 2 }
 0x12e   :  { %v243_v7 = vadd.f32 %v242_v6, %v241_v4 }
 0x12f   :  { %v315_v8 = vpop.eup %314 }
 0x130   :  { %v210_v10 = vrot.slane %v315_v8, 4  ;;  %v244_v11 = vrot.slane %v243_v7, 1 }
 0x132   :  { %v212_v12 = vmul.f32 %v210_v10, %v439_v0  ;;  %v245_v13 = vadd.f32 %v244_v11, %v243_v7  ;;  %v223_v0 = vadd.f32 %v222_v23, %v221_v21 }
 0x134   :  { %v213_v15 = vadd.f32 %v212_v12, %v205_v62  ;;  %246 = vst [vmem:[#allocation6] sm:$0x1] %v245_v13 }
 0x136   :  { %v224_v16 = vmul.f32 %v213_v15, %v213_v15  ;;  %215 = vst [vmem:[#allocation2] sm:$0xf0] %v213_v15 }
 0x137   :  { %257 = dma.vmem_to_hbm [thread:$0]  %s253_s4, 128, %s255_s14, [#allocation3]  }
 0x138   :  { %v226_v18 = vrot.slane %v224_v16, 4 }
 0x13a   :  { %v228_v19 = vsel %vm107_vm0, %v226_v18, 0.0 }
 0x13b   :  { %v229_v20 = vrot.slane %v228_v19, 4 }
 0x13d   :  { %v230_v22 = vadd.f32 %v229_v20, %v228_v19 }
 0x13f   :  { %v231_v24 = vrot.slane %v230_v22, 2 }
 0x141   :  { %v232_v25 = vadd.f32 %v231_v24, %v230_v22 }
 0x143   :  { %v233_v26 = vrot.slane %v232_v25, 1 }
 0x145   :  { %v234_v27 = vadd.f32 %v233_v26, %v232_v25 }
 0x147   :  { %v235_v28 = vadd.f32 %v234_v27, %v223_v0 }
 0x149   :  { %v236_v29 = vmul.f32 -0.5, %v235_v28 }
 0x14b   :  { %v304_v30 = vadd.f32 -7.351508, %v236_v29 }
 0x14d   :  { %238 = vst [vmem:[#allocation4] sm:$0x1] %v304_v30 }
 0x14e   :  { %268 = dma.vmem_to_hbm [thread:$0]  %s264_s15, 16, %s266_s18, [#allocation5]  }
 0x14f   :  { %279 = dma.vmem_to_hbm [thread:$0]  %s275_s20, 16, %s277_s23, [#allocation5]  }
 0x150   :  { %388 = dma.done.wait [#allocation3], 128  }
 0x151   :  { %389 = vsyncadd [#allocation3], 4294967168 }
 0x152   :  { %390 = dma.done.wait [#allocation5], 32  }
 0x153   :  { %391 = vsyncadd [#allocation5], 4294967264 }
 0x154   :  { %292 = vsyncpa [#allocation3], 1 }
 0x155   :  { %293 = vsyncpa [#allocation5], 1 }

</bundles_post_ra>
